<compile_context>
chip_gen: v6e
topology: v6e:2x2x1
jax: 0.10.0
libtpu: 0.0.40
codegen_flags: <defaults>
</compile_context>

<pallas_src>
import jax
import jax.numpy as jnp
from jax.experimental import pallas as pl
from jax.experimental.pallas import tpu as pltpu


# ----------------------------------------------------------------------------
# Kernel
# ----------------------------------------------------------------------------
def _mlp2_kernel(x_ref, w1_ref, b1_ref, w2_ref, b2_ref, o_ref):
    # x: (rows, pack*in) f32, w1: (pack*in, pack*hid) block-diag,
    # b1/b2: (1, pack*hid) f32, w2: (pack*hid, pack*hid) block-diag,
    # o: (rows, pack*hid).
    # Cast x to the weight dtype INSIDE the kernel: the cast is a free VPU op
    # here, and reading f32 directly avoids a separate wrapper-side HBM pass.
    x = x_ref[...].astype(w1_ref.dtype)
    h = jnp.dot(x, w1_ref[...], preferred_element_type=jnp.float32) + b1_ref[...]
    h = jnp.maximum(h, 0.0)                      # ReLU(fc1)
    h = h.astype(w2_ref.dtype)                   # keep 2nd matmul on native MXU path
    y = jnp.dot(h, w2_ref[...], preferred_element_type=jnp.float32) + b2_ref[...]
    y = jnp.maximum(y, 0.0)                      # ReLU(fc2)
    o_ref[...] = y.astype(o_ref.dtype)


# ----------------------------------------------------------------------------
# Tiling helpers
# ----------------------------------------------------------------------------
def _pick_pack(input_dim, hidden_dim):
    """Smallest power-of-two row-pack so packed rows are >= 128 lanes wide.

    Do NOT grow beyond the 128-lane minimum: MXU waste from the block-diagonal
    weights scales linearly with pack (v5e sits at the compute/BW crossover).
    """
    pack = 1
    while pack * min(input_dim, hidden_dim) < 128 and pack < 128:
        pack *= 2
    return pack


def _pick_rows_per_tile(packed_rows, requested=None):
    """Packed rows per grid step.

    Targets ~1-2 MiB of x + out per step (packed-row band [1024, 2048], i.e.
    ~[8192, 16384] original rows at pack=8) so the pipeline reaches the HBM
    roofline, aligned to 8 sublanes, and never collapses to a single grid
    step (pipelining + v7x 2-TensorCore sharding need >= 2 steps).
    """
    align = 8
    if requested is None:
        t = max(1024, min(2048, packed_rows // 4))
    else:
        t = requested
    t = max(align, (t // align) * align)
    # Cap at ceil(packed_rows / 2), rounded up to 8, so grid >= 2 steps.
    half = -(-packed_rows // 2)
    half = max(align, -(-half // align) * align)
    return min(t, half)


# ----------------------------------------------------------------------------
# Parameter preparation (hoisted out of the per-call path; run once at init)
# ----------------------------------------------------------------------------
def prepare_order_encoder_params(w1, b1, w2, b2, *, use_bf16=True):
    """w1: (in, hid), b1: (1, hid), w2: (hid, hid), b2: (1, hid).

    Builds block-diagonal kron(I_pack, W) weights and tiled biases once.
    """
    input_dim, hidden_dim = w1.shape
    pack = _pick_pack(input_dim, hidden_dim)
    wdt = jnp.bfloat16 if use_bf16 else w1.dtype
    eye = jnp.eye(pack, dtype=jnp.float32)
    w1b = jnp.kron(eye, w1.astype(jnp.float32)).astype(wdt)      # (pack*in,  pack*hid)
    w2b = jnp.kron(eye, w2.astype(jnp.float32)).astype(wdt)      # (pack*hid, pack*hid)
    b1b = jnp.tile(b1.reshape(1, hidden_dim).astype(jnp.float32), (1, pack))
    b2b = jnp.tile(b2.reshape(1, hidden_dim).astype(jnp.float32), (1, pack))
    return dict(pack=pack, input_dim=input_dim, hidden_dim=hidden_dim,
                use_bf16=use_bf16, w1b=w1b, b1b=b1b, w2b=w2b, b2b=b2b,
                w1=w1, b1=b1, w2=w2, b2=b2)


# ----------------------------------------------------------------------------
# Forward pass
# ----------------------------------------------------------------------------
def order_encoder_apply(params, order_states, *, tile_rows=None, out_dtype=None,
                        min_pallas_batch=1024):
    """order_states: (B, input_dim) f32 -> (B, hidden_dim).

    Computes relu(relu(x @ w1 + b1) @ w2 + b2).  When the params were prepared
    with use_bf16=True (default), the matmuls run on the bf16 MXU path with
    f32 accumulation and the output is bf16 (pass out_dtype=jnp.float32 to
    force an f32 output at the cost of 2x writeback traffic).
    """
    B, input_dim = order_states.shape
    hidden_dim = params["hidden_dim"]
    assert input_dim == params["input_dim"]

    if out_dtype is None:
        out_dtype = jnp.bfloat16 if params["use_bf16"] else jnp.float32

    # Tiny problems: let XLA fuse the two GEMMs (pallas launch overhead wins).
    if B < min_pallas_batch:
        h = jnp.maximum(order_states @ params["w1"] + params["b1"], 0.0)
        y = jnp.maximum(h @ params["w2"] + params["b2"], 0.0)
        return y.astype(out_dtype)

    pack = params["pack"]
    din = pack * input_dim
    dh = pack * hidden_dim

    # Pad only to a multiple of `pack` (<= pack-1 rows, ragged B only).  The
    # tile-granularity padding is handled by a partial final grid block whose
    # out-of-bounds rows are masked on store.
    b_pad = -(-B // pack) * pack
    x = order_states
    if b_pad != B:
        x = jnp.pad(x, ((0, b_pad - B), (0, 0)))
    packed_rows = b_pad // pack
    xp = x.reshape(packed_rows, din)            # row-major bit-identical: free

    rows = _pick_rows_per_tile(packed_rows, tile_rows)
    grid = (pl.cdiv(packed_rows, rows),)        # last block may be partial

    out_packed = pl.pallas_call(
        _mlp2_kernel,
        out_shape=jax.ShapeDtypeStruct((packed_rows, dh), out_dtype),
        grid_spec=pltpu.PrefetchScalarGridSpec(
            num_scalar_prefetch=0,
            grid=grid,
            in_specs=[
                pl.BlockSpec((rows, din), lambda i: (i, 0)),
                # Weights/biases are grid-invariant (constant index maps).
                # pipeline_mode=pl.Buffered(1) could single-buffer them
                # (~0.4 MiB here) but is negligible at these sizes.
                pl.BlockSpec((din, dh), lambda i: (0, 0)),
                pl.BlockSpec((1, dh), lambda i: (0, 0)),
                pl.BlockSpec((dh, dh), lambda i: (0, 0)),
                pl.BlockSpec((1, dh), lambda i: (0, 0)),
            ],
            out_specs=pl.BlockSpec((rows, dh), lambda i: (i, 0)),
        ),
        compiler_params=pltpu.CompilerParams(
            dimension_semantics=("parallel",),
            vmem_limit_bytes=32 * 1024 * 1024,   # headroom for v5e's 16 MiB default
        ),
    )(xp, params["w1b"], params["b1b"], params["w2b"], params["b2b"])

    out = out_packed.reshape(b_pad, hidden_dim)  # free reshape
    if b_pad != B:
        out = out[:B]                            # drops <= pack-1 pad rows
    return out


def order_encoder(order_states, w1, b1, w2, b2, *, use_bf16=True, **kwargs):
    """Convenience wrapper (prepares packed weights per call; prefer
    prepare_order_encoder_params + order_encoder_apply in a real model)."""
    params = prepare_order_encoder_params(w1, b1, w2, b2, use_bf16=use_bf16)
    return order_encoder_apply(params, order_states, **kwargs)


def _reference(x, w1, b1, w2, b2):
    h = jnp.maximum(x @ w1 + b1, 0.0)
    return jnp.maximum(h @ w2 + b2, 0.0)


if __name__ == "__main__":
    input_dim, hidden_dim = 16, 32
    key = jax.random.PRNGKey(0)
    k1, k2, k3, k4, kx = jax.random.split(key, 5)

    # Deterministic torch-Linear-like init (weights stored as (in, out)).
    bound1 = 1.0 / float(input_dim) ** 0.5
    bound2 = 1.0 / float(hidden_dim) ** 0.5
    w1 = jax.random.uniform(k1, (input_dim, hidden_dim), jnp.float32, -bound1, bound1)
    b1 = jax.random.uniform(k2, (1, hidden_dim), jnp.float32, -bound1, bound1)
    w2 = jax.random.uniform(k3, (hidden_dim, hidden_dim), jnp.float32, -bound2, bound2)
    b2 = jax.random.uniform(k4, (1, hidden_dim), jnp.float32, -bound2, bound2)

    # Prepare packed weights once (hoisted out of the per-call path).
    params_bf16 = prepare_order_encoder_params(w1, b1, w2, b2, use_bf16=True)
    params_f32 = prepare_order_encoder_params(w1, b1, w2, b2, use_bf16=False)

    # 1) Tiny batch -> XLA fallback path.
    x_small = jax.random.normal(kx, (8, input_dim), jnp.float32)
    out_small = jax.block_until_ready(
        order_encoder_apply(params_f32, x_small))
    assert out_small.shape == (8, hidden_dim)
    assert jnp.allclose(out_small, _reference(x_small, w1, b1, w2, b2),
                        atol=1e-5, rtol=1e-5)

    # 2) Pallas path, f32 compute/output (tight numerical check), aligned B.
    batch = 2048
    x = jax.random.normal(kx, (batch, input_dim), jnp.float32)
    out_f32 = jax.block_until_ready(order_encoder_apply(params_f32, x))
    assert out_f32.shape == (batch, hidden_dim)
    assert out_f32.dtype == jnp.float32
    assert jnp.allclose(out_f32, _reference(x, w1, b1, w2, b2),
                        atol=1e-4, rtol=1e-4)

    # 3) Pallas path, default bf16 compute + bf16 output, ragged B (exercises
    #    the pack-padding AND the partial final grid block / masked stores).
    batch2 = 2053
    x2 = jax.random.normal(kx, (batch2, input_dim), jnp.float32)
    out_bf16 = jax.block_until_ready(order_encoder_apply(params_bf16, x2))
    assert out_bf16.shape == (batch2, hidden_dim)
    assert out_bf16.dtype == jnp.bfloat16
    ref2 = _reference(x2, w1, b1, w2, b2)
    assert jnp.allclose(out_bf16.astype(jnp.float32), ref2, atol=5e-2, rtol=5e-2)
    # Explicit tail check: valid rows inside the partial last block are exact
    # (up to bf16 quantization), i.e. out-of-bounds rows were masked on store.
    assert jnp.allclose(out_bf16[-7:].astype(jnp.float32), ref2[-7:],
                        atol=5e-2, rtol=5e-2)

    print("KERNEL_OK")
</pallas_src>

<mosaic_0001>
module attributes {stable_mosaic.version = 11 : i64} {
  func.func @_mlp2_kernel(%arg0: i32, %arg1: memref<128x128xf32, #tpu.memory_space<vmem>>, %arg2: memref<128x256xf32, #tpu.memory_space<vmem>>, %arg3: memref<1x256xf32, #tpu.memory_space<vmem>>, %arg4: memref<256x256xf32, #tpu.memory_space<vmem>>, %arg5: memref<1x256xf32, #tpu.memory_space<vmem>>, %arg6: memref<128x256xf32, #tpu.memory_space<vmem>>) attributes {dimension_semantics = [#tpu.dimension_semantics<parallel>], iteration_bounds = array<i64: 2>, scalar_prefetch = 0 : i64, scratch_operands = 0 : i64, tpu.core_type = #tpu.core_type<tc>, window_params = [{transform_indices = @transform_0, window_bounds = array<i64: 128, 128>}, {pipeline_mode = #tpu.pipeline_mode<synchronous>, transform_indices = @transform_1, window_bounds = array<i64: 128, 256>}, {pipeline_mode = #tpu.pipeline_mode<synchronous>, transform_indices = @transform_2, window_bounds = array<i64: 1, 256>}, {pipeline_mode = #tpu.pipeline_mode<synchronous>, transform_indices = @transform_3, window_bounds = array<i64: 256, 256>}, {pipeline_mode = #tpu.pipeline_mode<synchronous>, transform_indices = @transform_4, window_bounds = array<i64: 1, 256>}, {transform_indices = @transform_5, window_bounds = array<i64: 128, 256>}]} {
    %c0 = arith.constant 0 : index
    %c0_0 = arith.constant 0 : index
    %0 = vector.load %arg1[%c0, %c0_0] : memref<128x128xf32, #tpu.memory_space<vmem>>, vector<128x128xf32>
    %c0_1 = arith.constant 0 : index
    %c0_2 = arith.constant 0 : index
    %1 = vector.load %arg2[%c0_1, %c0_2] : memref<128x256xf32, #tpu.memory_space<vmem>>, vector<128x256xf32>
    %cst = arith.constant dense<0.000000e+00> : vector<128x256xf32>
    %2 = tpu.matmul %0, %1, %cst {dimension_numbers = #tpu.dot_dimension_numbers<[1], [0], [0], [1], [0, 0, 1, 1], [], []>} : vector<128x128xf32>, vector<128x256xf32>, vector<128x256xf32> -> vector<128x256xf32>
    %c0_3 = arith.constant 0 : index
    %c0_4 = arith.constant 0 : index
    %3 = vector.load %arg3[%c0_3, %c0_4] : memref<1x256xf32, #tpu.memory_space<vmem>>, vector<1x256xf32>
    %4 = vector.broadcast %3 : vector<1x256xf32> to vector<128x256xf32>
    %5 = arith.addf %2, %4 : vector<128x256xf32>
    %cst_5 = arith.constant 0.000000e+00 : f32
    %6 = vector.broadcast %cst_5 : f32 to vector<128x256xf32>
    %7 = arith.maximumf %5, %6 : vector<128x256xf32>
    %c0_6 = arith.constant 0 : index
    %c0_7 = arith.constant 0 : index
    %8 = vector.load %arg4[%c0_6, %c0_7] : memref<256x256xf32, #tpu.memory_space<vmem>>, vector<256x256xf32>
    %cst_8 = arith.constant dense<0.000000e+00> : vector<128x256xf32>
    %9 = tpu.matmul %7, %8, %cst_8 {dimension_numbers = #tpu.dot_dimension_numbers<[1], [0], [0], [1], [0, 0, 1, 1], [], []>} : vector<128x256xf32>, vector<256x256xf32>, vector<128x256xf32> -> vector<128x256xf32>
    %c0_9 = arith.constant 0 : index
    %c0_10 = arith.constant 0 : index
    %10 = vector.load %arg5[%c0_9, %c0_10] : memref<1x256xf32, #tpu.memory_space<vmem>>, vector<1x256xf32>
    %11 = vector.broadcast %10 : vector<1x256xf32> to vector<128x256xf32>
    %12 = arith.addf %9, %11 : vector<128x256xf32>
    %cst_11 = arith.constant 0.000000e+00 : f32
    %13 = vector.broadcast %cst_11 : f32 to vector<128x256xf32>
    %14 = arith.maximumf %12, %13 : vector<128x256xf32>
    %c0_12 = arith.constant 0 : index
    %c0_13 = arith.constant 0 : index
    %15 = vector.load %arg6[%c0_12, %c0_13] : memref<128x256xf32, #tpu.memory_space<vmem>>, vector<128x256xf32>
    tpu.vector_store %arg6[%c0_12, %c0_13], %14 {strides = array<i32>} : memref<128x256xf32, #tpu.memory_space<vmem>>, vector<128x256xf32>,
    return
  }
  func.func @transform_0(%arg0: i32) -> (i32, i32) {
    %c0_i32 = arith.constant 0 : i32
    %c0_i32_0 = arith.constant 0 : i32
    return %arg0, %c0_i32 : i32, i32
  }
  func.func @transform_1(%arg0: i32) -> (i32, i32) {
    %c0_i32 = arith.constant 0 : i32
    %c0_i32_0 = arith.constant 0 : i32
    %c0_i32_1 = arith.constant 0 : i32
    return %c0_i32, %c0_i32_0 : i32, i32
  }
  func.func @transform_2(%arg0: i32) -> (i32, i32) {
    %c0_i32 = arith.constant 0 : i32
    %c0_i32_0 = arith.constant 0 : i32
    %c0_i32_1 = arith.constant 0 : i32
    return %c0_i32, %c0_i32_0 : i32, i32
  }
  func.func @transform_3(%arg0: i32) -> (i32, i32) {
    %c0_i32 = arith.constant 0 : i32
    %c0_i32_0 = arith.constant 0 : i32
    %c0_i32_1 = arith.constant 0 : i32
    return %c0_i32, %c0_i32_0 : i32, i32
  }
  func.func @transform_4(%arg0: i32) -> (i32, i32) {
    %c0_i32 = arith.constant 0 : i32
    %c0_i32_0 = arith.constant 0 : i32
    %c0_i32_1 = arith.constant 0 : i32
    return %c0_i32, %c0_i32_0 : i32, i32
  }
  func.func @transform_5(%arg0: i32) -> (i32, i32) {
    %c0_i32 = arith.constant 0 : i32
    %c0_i32_0 = arith.constant 0 : i32
    return %arg0, %c0_i32 : i32, i32
  }
}

</mosaic_0001>

<bundles_post_ra>
// kernel: tpu_custom_call.1
= control target key start
LH: loop header
LB: loop body
LE: loop exit
PB: predicated region body
PF: predicated region fallthrough
CT: control target
= control target key end

     0   :  { %10 = vsyncpa [#allocation3], 0  ;;  %s1634_s0 = inlined_call_operand.hbm [shape: f32[256,128], index: 0, kind: input, shape index: {}]   ;;  %s1635_s1 = inlined_call_operand.hbm [shape: f32[128,256], index: 1, kind: input, shape index: {}]   ;;  %s1636_s2 = inlined_call_operand.vmem [shape: f32[1,256], index: 2, kind: input, shape index: {}]   ;;  %s1637_s3 = inlined_call_operand.hbm [shape: f32[256,256], index: 3, kind: input, shape index: {}]   ;;  %s1638_s4 = inlined_call_operand.vmem [shape: f32[1,256], index: 4, kind: input, shape index: {}]   ;;  %s1639_s5 = inlined_call_operand.hbm [shape: f32[256,256], index: 5, kind: output, shape index: {}]  }
   0x1   :  { %12 = vsyncpa [#allocation3 + $0x1], 0 }
   0x2   :  { %13 = vsyncpa [#allocation6], 0 }
   0x3   :  { %14 = vsyncpa [#allocation4], 0 }
   0x4   :  { %16 = vsyncpa [#allocation4 + $0x1], 0  ;;  %s1286_s18 = smov 0   ;;  %s1288_s19 = smov 0  }
   0x5   :  { %s1290_s20 = smov 0   ;;  %s1292_s21 = smov 0  }
   0x6 LB: > { %s1307_s22 = sadd.s32 4294967295, %s1243_s21   ;;  %s935_s23 = sadd.s32 4294967294, %s1243_s21   ;;  %s1243_s21 = sphi %s1292_s21, %s1661_s21   ;;  %s1239_s20 = sphi %s1290_s20, %s1660_s20   ;;  %s1235_s19 = sphi %s1288_s19, %s1659_s19   ;;  %s1231_s18 = sphi %s1286_s18, %s1658_s18  }
   0x7   : > { %p42_p0 = scmp.ne.s32.totalorder %s1235_s19, %s1231_s18  ;;  %p1640_p1 = scmp.eq.s32.totalorder %s1307_s22, 0 }
   0x8   : > { %p156_p3 = scmp.eq.s32.totalorder %s935_s23, 1  ;;  %p936_p5 = scmp.ge.s32.totalorder %s1243_s21, 1 }
   0x9   : > { %p1316_p4 = por %p1640_p1, %p42_p0  ;;  %p163_p7 = scmp.lt.s32.totalorder %s1243_s21, 3 }
   0xa   : > { %p1321_p6 = por %p156_p3, %p42_p0  ;;  %s1245_s27 = smov [#allocation5]  }
   0xb   : > { %s1644_s24 = scalar_select %p1316_p4, 1, 0 }
   0xc   : > { %s1645_s25 = scalar_select %p1321_p6, 1, 0 }
   0xd   : > { %p1326_p8 = pnand %p936_p5, %p163_p7  ;;  %s175_s28 = sshll.u32 %s1245_s27, 4  ;;  %s176_s28 = int_to_ptr.vmem [resolvable:$true] %s175_s28 }
   0xe   : > { %s1246_s30 = smov [#allocation7]   ;;  %s1106_s7 = scalar_lea.vmem %s176_s28, 4096 }
   0xf   : > { %s1646_s26 = scalar_select %p1326_p8, 1, 0 }
  0x10   : > { %p1033_p9 = pneg %p1326_p8  ;;  %s191_s6 = sshll.u32 %s1246_s30, 4  ;;  %s192_s6 = int_to_ptr.vmem [resolvable:$true] %s191_s6 }
  0x11   : > { %p1107_p13 = scmp.ne.s32.totalorder %s176_s28, %s1106_s7  ;;  %p1114_p5 = scmp.lt.s32.totalorder %s176_s28, %s176_s28 }
  0x12   : > { %p1335_p11 = pnand %p1033_p9, %p1640_p1  ;;  %p1115_p7 = scmp.lt.s32.totalorder %s1106_s7, %s1106_s7 }
  0x14   : > { %p1097_p12 = pneg %p1335_p11  ;;  %p1116_p10 = por %p1115_p7, %p1114_p5 }
  0x16   : > { %p1109_p0 = pnand %p1107_p13, %p1097_p12 }
  0x18   : > { %p1110_p3 = pneg %p1109_p0 }
  0x1a   : > { %p1117_p9 = pnand %p1116_p10, %p1110_p3 }
  0x1c   : > { %1120 = shalt.err (!%p1117_p9)
}
  0x1d   : > { %s1247_s8 = smov 256   ;;  %s1248_s9 = smov 16  }
  0x1e   : > { %1036 = dma.hbm_to_vmem [thread:$0]  (!%p1335_p11), %s1635_s1, 4096, %s176_s28, [#allocation6], %s1247_s8, %s1247_s8, %s1248_s9  }
  0x1f   : > { %s1132_s12 = scalar_lea.vmem %s192_s6, 8192  ;;  %p1140_p2 = scmp.lt.s32.totalorder %s192_s6, %s192_s6 }
  0x20   : > { %p1133_p1 = scmp.ne.s32.totalorder %s192_s6, %s1132_s12  ;;  %p1141_p6 = scmp.lt.s32.totalorder %s1132_s12, %s1132_s12 }
  0x22   : > { %p1135_p13 = pnand %p1133_p1, %p1097_p12  ;;  %p1142_p5 = por %p1141_p6, %p1140_p2 }
  0x24   : > { %p1136_p0 = pneg %p1135_p13 }
  0x26   : > { %p1143_p10 = pnand %p1142_p5, %p1136_p0 }
  0x28   : > { %1146 = shalt.err (!%p1143_p10)
}
  0x29   : > { %1039 = dma.hbm_to_vmem [thread:$0]  (!%p1335_p11), %s1637_s3, 8192, %s192_s6, [#allocation6], %s1247_s8, %s1247_s8, %s1248_s9  }
  0x2a   : > { %s1358_s15 = sadd.s32 1, %s1243_s21   ;;  %s29_s16 = sadd.s32 1, %s1239_s20 }
  0x2b   : > { %s26_s17 = ssub.s32 %s1243_s21, %s1358_s15  ;;  %p36_p1 = scmp.ne.s32.totalorder %s1239_s20, %s1235_s19 }
  0x2c   : > { %p27_p2 = scmp.eq.s32.totalorder %s26_s17, 0  ;;  %p37_p6 = scmp.eq.s32.totalorder %s1243_s21, 0 }
  0x2d   : > { %p1648_p12 = scmp.eq.s32.totalorder %s1307_s22, 1  ;;  %p1050_p7 = scmp.lt.s32.totalorder %s1243_s21, 2 }
  0x2e   : > { %s1374_s27 = scalar_select %p27_p2, %s1239_s20, %s29_s16  }
  0x2f   : > { %p1368_p3 = por %p1648_p12, %p36_p1  ;;  %p38_p9 = por %p37_p6, %p36_p1 }
  0x30   : > { %s208_s28 = sand.u32 1, %s1239_s20   ;;  %s954_s30 = sshll.u32 %s1243_s21, 11 }
  0x31   : > { %s1649_s23 = scalar_select %p1368_p3, 1, 0 }
  0x32   : > { %s940_s29 = sshll.u32 %s208_s28, 7  ;;  %s1381_s8 = scalar_lea.hbm %s1634_s0, %s954_s30 }
  0x33   : > { %s212_s9 = scalar_lea.vmem [#allocation2], %s940_s29  ;;  %p1385_p11 = pnand %p1050_p7, %p38_p9 }
  0x34   : > { %s219_s10 = sshll.u32 %s212_s9, 4  ;;  %s1389_s12 = scalar_lea.sflag [#allocation3], %s208_s28  ;;  %s1383_s10 = int_to_ptr.vmem [resolvable:$true] %s219_s10 }
  0x35   : > { %s1147_s13 = scalar_lea.hbm %s1381_s8, 2048  ;;  %p1149_p0 = pneg %p1385_p11 }
  0x36   : > { %p1148_p13 = scmp.ne.s32.totalorder %s1381_s8, %s1147_s13  ;;  %s1152_s17 = scalar_lea.hbm %s1634_s0, 4096 }
  0x37   : > { %p1153_p1 = scmp.lt.s32.totalorder %s1381_s8, %s1634_s0  ;;  %p1154_p2 = scmp.lt.s32.totalorder %s1152_s17, %s1147_s13 }
  0x38   : > { %p1150_p5 = pnand %p1149_p0, %p1148_p13 }
  0x39   : > { %p1155_p6 = por %p1154_p2, %p1153_p1 }
  0x3a   : > { %p1151_p10 = pneg %p1150_p5 }
  0x3c   : > { %p1156_p12 = pnand %p1155_p6, %p1151_p10 }
  0x3e   : > { %1159 = shalt.err (!%p1156_p12)
}
  0x3f   : > { %s1160_s28 = scalar_lea.vmem %s1383_s10, 2048  ;;  %s1249_s6 = smov [#allocation2]  }
  0x40   : > { %p1161_p7 = scmp.ne.s32.totalorder %s1383_s10, %s1160_s28  ;;  %s1165_s7 = sshll.u32 %s1249_s6, 4  ;;  %s1166_s7 = int_to_ptr.vmem [resolvable:$false] %s1165_s7 }
  0x41   : > { %s1167_s9 = scalar_lea.vmem %s1166_s7, 4096  ;;  %p1168_p5 = scmp.lt.s32.totalorder %s1383_s10, %s1166_s7 }
  0x42   : > { %p1163_p9 = pnand %p1161_p7, %p1149_p0  ;;  %p1169_p3 = scmp.lt.s32.totalorder %s1167_s9, %s1160_s28 }
  0x44   : > { %p1164_p13 = pneg %p1163_p9  ;;  %p1170_p4 = por %p1169_p3, %p1168_p5 }
  0x46   : > { %p1171_p8 = pnand %p1170_p4, %p1164_p13 }
  0x48   : > { %1174 = shalt.err (!%p1171_p8)
}
  0x49   : > { %s1250_s13 = smov 128   ;;  %s1251_s14 = smov 8  }
  0x4a   : > { %1043 = dma.hbm_to_vmem [thread:$0]  (!%p1385_p11), %s1381_s8, 2048, %s1383_s10, %s1389_s12, %s1250_s13, %s1250_s13, %s1251_s14  }
  0x4b   : > { %p1651_p0 = scmp.ne.s32.totalorder %s1646_s26, 0 }
  0x4c   : > { %s1413_s16 = sand.u32 (!%p1651_p0), 1, %s1235_s19   ;;  %p1652_p4 = scmp.ne.s32.totalorder (!%p1651_p0), %s1644_s24, 0 }
  0x4d   : > { %231 = sbr.rel (%p1651_p0) target bundleno = 592 (0x250), region = 40  ;;  %s944_s17 = sshll.u32 (!%p1651_p0), %s1413_s16, 7 }
  0x4e   : > { %s234_s29 = scalar_lea.sflag (!%p1651_p0), [#allocation3], %s1413_s16  ;;  %s1417_s30 = scalar_lea.vmem (!%p1651_p0), [#allocation2], %s944_s17 }
  0x52   : > { %1218 = dma.done.wait (%p1652_p4), %s234_s29, 2048  }
  0x53   : > { %1220 = vsyncadd (%p1652_p4), %s234_s29, 4294965248  ;;  %p1653_p8 = scmp.eq.s32.totalorder %s1307_s22, 0 }
  0x55   : > { %1222 = dma.done.wait (%p1653_p8), [#allocation6], 12288   ;;  %p1654_p3 = pmov %p1653_p8 }
  0x56   : > { %v1252_v0 = vmov 0.0   ;;  %v321_v1 = vld [vmem:[#allocation5 + $0xf8] sm:$0xff]  ;;  %v320_v2 = vld [vmem:[#allocation5 + $0xf0] sm:$0xff]  ;;  %v319_v3 = vld [vmem:[#allocation5 + $0xe8] sm:$0xff]  ;;  %s947_s11 = sshll.u32 %s1413_s16, 8  ;;  %s956_s28 = sshll.u32 %s1307_s22, 12 }
  0x57   : > { %1224 = vsyncadd (%p1654_p3), [#allocation6], 4294955008  ;;  %398 = vmatprep.mubr.f32.mxu0 %v1252_v0  ;;  %334 = vmatprep.subr.mxu0 %v321_v1  ;;  %v318_v4 = vld [vmem:[#allocation5 + $0xe0] sm:$0xff]  ;;  %v317_v5 = vld [vmem:[#allocation5 + $0xd8] sm:$0xff]  ;;  %s1520_s12 = scalar_lea.vmem [#allocation8], %s947_s11  ;;  %s1587_s13 = scalar_lea.hbm %s1639_s5, %s956_s28 }
  0x58   : > { %335 = vmatpush1.msra.mxu0 %v320_v2  ;;  %v316_v6 = vld [vmem:[#allocation5 + $0xd0] sm:$0xff]  ;;  %v315_v7 = vld [vmem:[#allocation5 + $0xc8] sm:$0xff]  ;;  %v314_v8 = vld [vmem:[#allocation5 + $0xc0] sm:$0xff]  ;;  %s843_s6 = sshll.u32 %s1520_s12, 4  ;;  %s829_s22 = scalar_lea.sflag [#allocation4], %s1413_s16  ;;  %s1589_s6 = int_to_ptr.vmem [resolvable:$true] %s843_s6 }
  0x59   : > { %336 = vmatprep.subr.mxu0 %v319_v3  ;;  %v313_v9 = vld [vmem:[#allocation5 + $0xb8] sm:$0xff]  ;;  %v312_v10 = vld [vmem:[#allocation5 + $0xb0] sm:$0xff]  ;;  %v311_v11 = vld [vmem:[#allocation5 + $0xa8] sm:$0xff]  ;;  %s1175_s14 = scalar_lea.vmem %s1589_s6, 4096  ;;  %p1655_p10 = scmp.ne.s32.totalorder %s1649_s23, 0 }
  0x5a   : > { %337 = vmatpush1.msra.mxu0 %v318_v4  ;;  %v310_v12 = vld [vmem:[#allocation5 + $0xa0] sm:$0xff]  ;;  %v309_v13 = vld [vmem:[#allocation5 + $0x98] sm:$0xff]  ;;  %v308_v14 = vld [vmem:[#allocation5 + $0x90] sm:$0xff]  ;;  %p1176_p11 = scmp.ne.s32.totalorder %s1589_s6, %s1175_s14  ;;  %s1253_s17 = smov [#allocation8]  }
  0x5b   : > { %338 = vmatprep.subr.mxu0 %v317_v5  ;;  %v307_v15 = vld [vmem:[#allocation5 + $0x88] sm:$0xff]  ;;  %v306_v16 = vld [vmem:[#allocation5 + $0x80] sm:$0xff]  ;;  %v305_v17 = vld [vmem:[#allocation5 + $0x78] sm:$0xff]  ;;  %s1179_s29 = sshll.u32 %s1253_s17, 4  ;;  %s1180_s29 = int_to_ptr.vmem [resolvable:$false] %s1179_s29 }
  0x5c   : > { %339 = vmatpush1.msra.mxu0 %v316_v6  ;;  %v304_v18 = vld [vmem:[#allocation5 + $0x70] sm:$0xff]  ;;  %v303_v19 = vld [vmem:[#allocation5 + $0x68] sm:$0xff]  ;;  %v558_v20 = vld [vmem:[#allocation7 + $0xf8] sm:$0xff]  ;;  %p1177_p1 = pnand %p1176_p11, %p1655_p10  ;;  %p1182_p6 = scmp.lt.s32.totalorder %s1589_s6, %s1180_s29 }
  0x5d   : > { %340 = vmatprep.subr.mxu0 %v315_v7  ;;  %v302_v21 = vld [vmem:[#allocation5 + $0x60] sm:$0xff]  ;;  %v557_v22 = vld [vmem:[#allocation7 + $0xf0] sm:$0xff]  ;;  %957 = vmatprep.subr.mxu1 %v558_v20  ;;  %v301_v23 = vld [vmem:[#allocation5 + $0x58] sm:$0xff] }
  0x5e   : > { %341 = vmatpush1.msra.mxu0 %v314_v8  ;;  %v556_v24 = vld [vmem:[#allocation7 + $0xe8] sm:$0xff]  ;;  %989 = vmatpush1.msra.mxu1 %v557_v22  ;;  %v300_v25 = vld [vmem:[#allocation5 + $0x50] sm:$0xff]  ;;  %v555_v26 = vld [vmem:[#allocation7 + $0xe0] sm:$0xff]  ;;  %p1178_p2 = pneg %p1177_p1 }
  0x5f   : > { %342 = vmatprep.subr.mxu0 %v313_v9  ;;  %958 = vmatprep.subr.mxu1 %v556_v24  ;;  %v299_v27 = vld [vmem:[#allocation5 + $0x48] sm:$0xff]  ;;  %v554_v28 = vld [vmem:[#allocation7 + $0xd8] sm:$0xff]  ;;  %v298_v29 = vld [vmem:[#allocation5 + $0x40] sm:$0xff] }
  0x60   : > { %343 = vmatpush1.msra.mxu0 %v312_v10  ;;  %990 = vmatpush1.msra.mxu1 %v555_v26  ;;  %v553_v30 = vld [vmem:[#allocation7 + $0xd0] sm:$0xff]  ;;  %v297_v31 = vld [vmem:[#allocation5 + $0x38] sm:$0xff]  ;;  %v552_v32 = vld [vmem:[#allocation7 + $0xc8] sm:$0xff] }
  0x61   : > { %344 = vmatprep.subr.mxu0 %v311_v11  ;;  %959 = vmatprep.subr.mxu1 %v554_v28  ;;  %v296_v33 = vld [vmem:[#allocation5 + $0x30] sm:$0xff]  ;;  %v551_v34 = vld [vmem:[#allocation7 + $0xc0] sm:$0xff]  ;;  %v295_v35 = vld [vmem:[#allocation5 + $0x28] sm:$0xff] }
  0x62   : > { %345 = vmatpush1.msra.mxu0 %v310_v12  ;;  %991 = vmatpush1.msra.mxu1 %v553_v30  ;;  %v550_v36 = vld [vmem:[#allocation7 + $0xb8] sm:$0xff]  ;;  %v294_v37 = vld [vmem:[#allocation5 + $0x20] sm:$0xff]  ;;  %v549_v38 = vld [vmem:[#allocation7 + $0xb0] sm:$0xff] }
  0x63   : > { %346 = vmatprep.subr.mxu0 %v309_v13  ;;  %960 = vmatprep.subr.mxu1 %v552_v32  ;;  %v293_v39 = vld [vmem:[#allocation5 + $0x18] sm:$0xff]  ;;  %v548_v40 = vld [vmem:[#allocation7 + $0xa8] sm:$0xff]  ;;  %v292_v41 = vld [vmem:[#allocation5 + $0x10] sm:$0xff] }
  0x64   : > { %347 = vmatpush1.msra.mxu0 %v308_v14  ;;  %992 = vmatpush1.msra.mxu1 %v551_v34  ;;  %v547_v42 = vld [vmem:[#allocation7 + $0xa0] sm:$0xff]  ;;  %v291_v43 = vld [vmem:[#allocation5 + $0x8] sm:$0xff]  ;;  %v546_v44 = vld [vmem:[#allocation7 + $0x98] sm:$0xff] }
  0x65   : > { %348 = vmatprep.subr.mxu0 %v307_v15  ;;  %961 = vmatprep.subr.mxu1 %v550_v36  ;;  %v290_v45 = vld [vmem:[#allocation5] sm:$0xff]  ;;  %v545_v46 = vld [vmem:[#allocation7 + $0x90] sm:$0xff]  ;;  %v544_v48 = vld [vmem:[#allocation7 + $0x88] sm:$0xff] }
  0x66   : > { %349 = vmatpush1.msra.mxu0 %v306_v16  ;;  %993 = vmatpush1.msra.mxu1 %v549_v38  ;;  %v274_v47 = vld [vmem:[%s1417_s30] sm:$0xff]  ;;  %v275_v50 = vld [vmem:[%s1417_s30 + $0x8] sm:$0xff]  ;;  %v542_v51 = vld [vmem:[#allocation7 + $0x78] sm:$0xff] }
  0x67   : > { %350 = vmatprep.subr.mxu0 %v305_v17  ;;  %962 = vmatprep.subr.mxu1 %v548_v40  ;;  %v543_v49 = vld [vmem:[#allocation7 + $0x80] sm:$0xff]  ;;  %v541_v52 = vld [vmem:[#allocation7 + $0x70] sm:$0xff]  ;;  %v540_v54 = vld [vmem:[#allocation7 + $0x68] sm:$0xff] }
  0x68   : > { %351 = vmatpush1.msra.mxu0 %v304_v18  ;;  %994 = vmatpush1.msra.mxu1 %v547_v42  ;;  %v276_v53 = vld [vmem:[%s1417_s30 + $0x10] sm:$0xff]  ;;  %v539_v55 = vld [vmem:[#allocation7 + $0x60] sm:$0xff]  ;;  %v277_v56 = vld [vmem:[%s1417_s30 + $0x18] sm:$0xff] }
  0x69   : > { %352 = vmatprep.subr.mxu0 %v303_v19  ;;  %963 = vmatprep.subr.mxu1 %v546_v44  ;;  %v538_v57 = vld [vmem:[#allocation7 + $0x58] sm:$0xff]  ;;  %v537_v58 = vld [vmem:[#allocation7 + $0x50] sm:$0xff]  ;;  %v278_v59 = vld [vmem:[%s1417_s30 + $0x20] sm:$0xff] }
  0x6a   : > { %353 = vmatpush1.msra.mxu0 %v302_v21  ;;  %995 = vmatpush1.msra.mxu1 %v545_v46  ;;  %v536_v60 = vld [vmem:[#allocation7 + $0x48] sm:$0xff]  ;;  %v535_v61 = vld [vmem:[#allocation7 + $0x40] sm:$0xff]  ;;  %v534_v63 = vld [vmem:[#allocation7 + $0x38] sm:$0xff] }
  0x6b   : > { %354 = vmatprep.subr.mxu0 %v301_v23  ;;  %964 = vmatprep.subr.mxu1 %v544_v48  ;;  %v279_v62 = vld [vmem:[%s1417_s30 + $0x28] sm:$0xff]  ;;  %v533_v1 = vld [vmem:[#allocation7 + $0x30] sm:$0xff]  ;;  %v531_v4 = vld [vmem:[#allocation7 + $0x20] sm:$0xff] }
  0x6c   : > { %355 = vmatpush1.msra.mxu0 %v300_v25  ;;  %996 = vmatpush1.msra.mxu1 %v543_v49  ;;  %v280_v2 = vld [vmem:[%s1417_s30 + $0x30] sm:$0xff]  ;;  %v532_v3 = vld [vmem:[#allocation7 + $0x28] sm:$0xff]  ;;  %v281_v5 = vld [vmem:[%s1417_s30 + $0x38] sm:$0xff] }
  0x6d   : > { %356 = vmatprep.subr.mxu0 %v299_v27  ;;  %965 = vmatprep.subr.mxu1 %v542_v51  ;;  %v530_v6 = vld [vmem:[#allocation7 + $0x18] sm:$0xff]  ;;  %v529_v7 = vld [vmem:[#allocation7 + $0x10] sm:$0xff]  ;;  %v528_v8 = vld [vmem:[#allocation7 + $0x8] sm:$0xff] }
  0x6e   : > { %357 = vmatpush1.msra.mxu0 %v298_v29  ;;  %997 = vmatpush1.msra.mxu1 %v541_v52  ;;  %v527_v9 = vld [vmem:[#allocation7] sm:$0xff]  ;;  %v590_v11 = vld [vmem:[#allocation7 + $0x1f8] sm:$0xff]  ;;  %v589_v12 = vld [vmem:[#allocation7 + $0x1f0] sm:$0xff] }
  0x6f   : > { %358 = vmatprep.subr.mxu0 %v297_v31  ;;  %966 = vmatprep.subr.mxu1 %v540_v54  ;;  %v282_v10 = vld [vmem:[%s1417_s30 + $0x40] sm:$0xff]  ;;  %v588_v13 = vld [vmem:[#allocation7 + $0x1e8] sm:$0xff]  ;;  %v586_v16 = vld [vmem:[#allocation7 + $0x1d8] sm:$0xff] }
  0x70   : > { %359 = vmatpush1.msra.mxu0 %v296_v33  ;;  %998 = vmatpush1.msra.mxu1 %v539_v55  ;;  %v587_v14 = vld [vmem:[#allocation7 + $0x1e0] sm:$0xff]  ;;  %v283_v15 = vld [vmem:[%s1417_s30 + $0x48] sm:$0xff]  ;;  %v585_v17 = vld [vmem:[#allocation7 + $0x1d0] sm:$0xff] }
  0x71   : > { %360 = vmatprep.subr.mxu0 %v295_v35  ;;  %967 = vmatprep.subr.mxu1 %v538_v57  ;;  %v584_v18 = vld [vmem:[#allocation7 + $0x1c8] sm:$0xff]  ;;  %v583_v19 = vld [vmem:[#allocation7 + $0x1c0] sm:$0xff]  ;;  %v582_v21 = vld [vmem:[#allocation7 + $0x1b8] sm:$0xff] }
  0x72   : > { %361 = vmatpush1.msra.mxu0 %v294_v37  ;;  %999 = vmatpush1.msra.mxu1 %v537_v58  ;;  %v580_v23 = vld [vmem:[#allocation7 + $0x1a8] sm:$0xff]  ;;  %v285_v25 = vld [vmem:[%s1417_s30 + $0x58] sm:$0xff]  ;;  %v577_v27 = vld [vmem:[#allocation7 + $0x190] sm:$0xff] }
  0x73   : > { %362 = vmatprep.subr.mxu0 %v293_v39  ;;  %968 = vmatprep.subr.mxu1 %v536_v60  ;;  %v575_v29 = vld [vmem:[#allocation7 + $0x180] sm:$0xff]  ;;  %v574_v31 = vld [vmem:[#allocation7 + $0x178] sm:$0xff]  ;;  %v572_v33 = vld [vmem:[#allocation7 + $0x168] sm:$0xff] }
  0x74   : > { %363 = vmatpush1.msra.mxu0 %v292_v41  ;;  %1000 = vmatpush1.msra.mxu1 %v535_v61  ;;  %v287_v35 = vld [vmem:[%s1417_s30 + $0x68] sm:$0xff]  ;;  %v569_v37 = vld [vmem:[#allocation7 + $0x150] sm:$0xff]  ;;  %v567_v39 = vld [vmem:[#allocation7 + $0x140] sm:$0xff] }
  0x75   : > { %364 = vmatprep.subr.mxu0 %v291_v43  ;;  %969 = vmatprep.subr.mxu1 %v534_v63  ;;  %v289_v41 = vld [vmem:[%s1417_s30 + $0x78] sm:$0xff]  ;;  %v565_v43 = vld [vmem:[#allocation7 + $0x130] sm:$0xff] }
  0x76   : > { %365 = vmatpush1.msra.mxu0 %v290_v45  ;;  %1001 = vmatpush1.msra.mxu1 %v533_v1  ;;  %v563_v45 = vld [vmem:[#allocation7 + $0x120] sm:$0xff] }
  0x77   : > { %399 = vmatmul.mubr.f32.vlgmr.msra.gmra.mxu0 %v274_v47  ;;  %603 = vmatprep.subr.mxu0 %v558_v20  ;;  %v284_v20 = vld [vmem:[%s1417_s30 + $0x50] sm:$0xff]  ;;  %v560_v47 = vld [vmem:[#allocation7 + $0x108] sm:$0xff] }
  0x78   : > { %404 = vmatprep.mubr.f32.mxu0 %v1252_v0  ;;  %604 = vmatpush1.msra.mxu0 %v557_v22  ;;  %v581_v22 = vld [vmem:[#allocation7 + $0x1b0] sm:$0xff] }
  0x79   : > { %605 = vmatprep.subr.mxu0 %v556_v24  ;;  %970 = vmatprep.subr.mxu1 %v532_v3  ;;  %v579_v24 = vld [vmem:[#allocation7 + $0x1a0] sm:$0xff] }
  0x7a   : > { %606 = vmatpush1.msra.mxu0 %v555_v26  ;;  %1002 = vmatpush1.msra.mxu1 %v531_v4  ;;  %v578_v26 = vld [vmem:[#allocation7 + $0x198] sm:$0xff] }
  0x7b   : > { %405 = vmatmul.mubr.f32.gmra.mxu0 %v275_v50  ;;  %607 = vmatprep.subr.mxu0 %v554_v28  ;;  %v576_v28 = vld [vmem:[#allocation7 + $0x188] sm:$0xff] }
  0x7c   : > { %410 = vmatprep.mubr.f32.mxu0 %v1252_v0  ;;  %608 = vmatpush1.msra.mxu0 %v553_v30  ;;  %v286_v30 = vld [vmem:[%s1417_s30 + $0x60] sm:$0xff] }
  0x7d   : > { %609 = vmatprep.subr.mxu0 %v552_v32  ;;  %971 = vmatprep.subr.mxu1 %v530_v6  ;;  %v573_v32 = vld [vmem:[#allocation7 + $0x170] sm:$0xff] }
  0x7e   : > { %610 = vmatpush1.msra.mxu0 %v551_v34  ;;  %1003 = vmatpush1.msra.mxu1 %v529_v7  ;;  %v571_v34 = vld [vmem:[#allocation7 + $0x160] sm:$0xff] }
  0x7f   : > { %411 = vmatmul.mubr.f32.gmra.mxu0 %v276_v53  ;;  %611 = vmatprep.subr.mxu0 %v550_v36  ;;  %v570_v36 = vld [vmem:[#allocation7 + $0x158] sm:$0xff] }
  0x80   : > { %416 = vmatprep.mubr.f32.mxu0 %v1252_v0  ;;  %612 = vmatpush1.msra.mxu0 %v549_v38  ;;  %v568_v38 = vld [vmem:[#allocation7 + $0x148] sm:$0xff] }
  0x81   : > { %613 = vmatprep.subr.mxu0 %v548_v40  ;;  %972 = vmatprep.subr.mxu1 %v528_v8  ;;  %v288_v40 = vld [vmem:[%s1417_s30 + $0x70] sm:$0xff]  ;;  %s1181_s30 = scalar_lea.vmem %s1180_s29, 8192 }
  0x82   : > { %614 = vmatpush1.msra.mxu0 %v547_v42  ;;  %1004 = vmatpush1.msra.mxu1 %v527_v9  ;;  %v566_v42 = vld [vmem:[#allocation7 + $0x138] sm:$0xff]  ;;  %p1183_p12 = scmp.lt.s32.totalorder %s1181_s30, %s1175_s14 }
  0x83   : > { %417 = vmatmul.mubr.f32.gmra.mxu0 %v277_v56  ;;  %615 = vmatprep.subr.mxu0 %v546_v44  ;;  %v564_v44 = vld [vmem:[#allocation7 + $0x128] sm:$0xff] }
  0x84   : > { %422 = vmatprep.mubr.f32.mxu0 %v1252_v0  ;;  %616 = vmatpush1.msra.mxu0 %v545_v46  ;;  %v561_v46 = vld [vmem:[#allocation7 + $0x110] sm:$0xff]  ;;  %p1184_p7 = por %p1183_p12, %p1182_p6 }
  0x85   : > { %617 = vmatprep.subr.mxu0 %v544_v48  ;;  %973 = vmatprep.subr.mxu1 %v590_v11  ;;  %v559_v48 = vld [vmem:[#allocation7 + $0x100] sm:$0xff] }
  0x86   : > { %618 = vmatpush1.msra.mxu0 %v543_v49  ;;  %1005 = vmatpush2.msra.mxu1 %v589_v12  ;;  %v324_v49 = vlaneseq  ;;  %p1185_p9 = pnand %p1184_p7, %p1178_p2 }
  0x87   : > { %423 = vmatmul.mubr.f32.gmra.mxu0 %v278_v59  ;;  %619 = vmatprep.subr.mxu0 %v542_v51 }
  0x88   : > { %428 = vmatprep.mubr.f32.mxu0 %v1252_v0  ;;  %620 = vmatpush1.msra.mxu0 %v541_v52  ;;  %v1459_v50 = vshrl.u32 %v324_v49, 7  ;;  %v322_v52 = vld [vmem:[%s1636_s2] sm:$0x3] }
  0x89   : > { %621 = vmatprep.subr.mxu0 %v540_v54  ;;  %974 = vmatprep.subr.mxu1 %v588_v13 }
  0x8a   : > { %622 = vmatpush1.msra.mxu0 %v539_v55  ;;  %1006 = vmatpush2.msra.mxu1 %v587_v14  ;;  %v326_v51 = vsub.s32 0, %v1459_v50  ;;  %v330_v53 = vsub.s32 1, %v1459_v50 }
  0x8b   : > { %429 = vmatmul.mubr.f32.gmra.mxu0 %v279_v62  ;;  %623 = vmatprep.subr.mxu0 %v538_v57 }
  0x8c   : > { %434 = vmatprep.mubr.f32.mxu0 %v1252_v0  ;;  %624 = vmatpush1.msra.mxu0 %v537_v58  ;;  %v1468_v54 = vrot.slane %v322_v52, %v326_v51  ;;  %v1472_v55 = vrot.slane %v322_v52, %v330_v53 }
  0x8d   : > { %625 = vmatprep.subr.mxu0 %v536_v60  ;;  %975 = vmatprep.subr.mxu1 %v586_v16 }
  0x8e   : > { %626 = vmatpush1.msra.mxu0 %v535_v61  ;;  %1007 = vmatpush2.msra.mxu1 %v585_v17 }
  0x8f   : > { %435 = vmatmul.mubr.f32.gmra.mxu0 %v280_v2  ;;  %627 = vmatprep.subr.mxu0 %v534_v63 }
  0x90   : > { %440 = vmatprep.mubr.f32.mxu0 %v1252_v0  ;;  %628 = vmatpush1.msra.mxu0 %v533_v1 }
  0x91   : > { %629 = vmatprep.subr.mxu0 %v532_v3  ;;  %976 = vmatprep.subr.mxu1 %v584_v18 }
  0x92   : > { %630 = vmatpush1.msra.mxu0 %v531_v4  ;;  %1008 = vmatpush2.msra.mxu1 %v583_v19 }
  0x93   : > { %441 = vmatmul.mubr.f32.gmra.mxu0 %v281_v5  ;;  %631 = vmatprep.subr.mxu0 %v530_v6 }
  0x94   : > { %446 = vmatprep.mubr.f32.mxu0 %v1252_v0  ;;  %632 = vmatpush1.msra.mxu0 %v529_v7 }
  0x95   : > { %633 = vmatprep.subr.mxu0 %v528_v8  ;;  %977 = vmatprep.subr.mxu1 %v582_v21 }
  0x96   : > { %634 = vmatpush1.msra.mxu0 %v527_v9  ;;  %1009 = vmatpush2.msra.mxu1 %v581_v22 }
  0x97   : > { %447 = vmatmul.mubr.f32.gmra.mxu0 %v282_v10  ;;  %635 = vmatprep.subr.mxu0 %v590_v11 }
  0x98   : > { %452 = vmatprep.mubr.f32.mxu0 %v1252_v0  ;;  %636 = vmatpush2.msra.mxu0 %v589_v12 }
  0x99   : > { %637 = vmatprep.subr.mxu0 %v588_v13  ;;  %978 = vmatprep.subr.mxu1 %v580_v23 }
  0x9a   : > { %638 = vmatpush2.msra.mxu0 %v587_v14  ;;  %1010 = vmatpush2.msra.mxu1 %v579_v24 }
  0x9b   : > { %453 = vmatmul.mubr.f32.gmra.mxu0 %v283_v15  ;;  %639 = vmatprep.subr.mxu0 %v586_v16 }
  0x9c   : > { %458 = vmatprep.mubr.f32.mxu0 %v1252_v0  ;;  %640 = vmatpush2.msra.mxu0 %v585_v17 }
  0x9d   : > { %641 = vmatprep.subr.mxu0 %v584_v18  ;;  %979 = vmatprep.subr.mxu1 %v578_v26 }
  0x9e   : > { %642 = vmatpush2.msra.mxu0 %v583_v19  ;;  %1011 = vmatpush2.msra.mxu1 %v577_v27 }
  0x9f   : > { %459 = vmatmul.mubr.f32.gmra.mxu0 %v284_v20  ;;  %643 = vmatprep.subr.mxu0 %v582_v21 }
  0xa0   : > { %464 = vmatprep.mubr.f32.mxu0 %v1252_v0  ;;  %644 = vmatpush2.msra.mxu0 %v581_v22 }
  0xa1   : > { %645 = vmatprep.subr.mxu0 %v580_v23  ;;  %980 = vmatprep.subr.mxu1 %v576_v28 }
  0xa2   : > { %646 = vmatpush2.msra.mxu0 %v579_v24  ;;  %1012 = vmatpush2.msra.mxu1 %v575_v29 }
  0xa3   : > { %465 = vmatmul.mubr.f32.gmra.mxu0 %v285_v25  ;;  %647 = vmatprep.subr.mxu0 %v578_v26 }
  0xa4   : > { %470 = vmatprep.mubr.f32.mxu0 %v1252_v0  ;;  %648 = vmatpush2.msra.mxu0 %v577_v27 }
  0xa5   : > { %649 = vmatprep.subr.mxu0 %v576_v28  ;;  %981 = vmatprep.subr.mxu1 %v574_v31 }
  0xa6   : > { %650 = vmatpush2.msra.mxu0 %v575_v29  ;;  %1013 = vmatpush2.msra.mxu1 %v573_v32 }
  0xa7   : > { %471 = vmatmul.mubr.f32.gmra.mxu0 %v286_v30  ;;  %651 = vmatprep.subr.mxu0 %v574_v31 }
  0xa8   : > { %476 = vmatprep.mubr.f32.mxu0 %v1252_v0  ;;  %652 = vmatpush2.msra.mxu0 %v573_v32 }
  0xa9   : > { %653 = vmatprep.subr.mxu0 %v572_v33  ;;  %982 = vmatprep.subr.mxu1 %v572_v33 }
  0xaa   : > { %654 = vmatpush2.msra.mxu0 %v571_v34  ;;  %1014 = vmatpush2.msra.mxu1 %v571_v34 }
  0xab   : > { %477 = vmatmul.mubr.f32.gmra.mxu0 %v287_v35  ;;  %655 = vmatprep.subr.mxu0 %v570_v36 }
  0xac   : > { %482 = vmatprep.mubr.f32.mxu0 %v1252_v0  ;;  %656 = vmatpush2.msra.mxu0 %v569_v37 }
  0xad   : > { %657 = vmatprep.subr.mxu0 %v568_v38  ;;  %983 = vmatprep.subr.mxu1 %v570_v36 }
  0xae   : > { %658 = vmatpush2.msra.mxu0 %v567_v39  ;;  %1015 = vmatpush2.msra.mxu1 %v569_v37 }
  0xaf   : > { %483 = vmatmul.mubr.f32.gmra.mxu0 %v288_v40  ;;  %659 = vmatprep.subr.mxu0 %v566_v42 }
  0xb0   : > { %488 = vmatprep.mubr.f32.mxu0 %v1252_v0  ;;  %660 = vmatpush2.msra.mxu0 %v565_v43  ;;  %v562_v0 = vld [vmem:[#allocation7 + $0x118] sm:$0xff] }
  0xb1   : > { %661 = vmatprep.subr.mxu0 %v564_v44  ;;  %984 = vmatprep.subr.mxu1 %v568_v38 }
  0xb2   : > { %662 = vmatpush2.msra.mxu0 %v563_v45  ;;  %1016 = vmatpush2.msra.mxu1 %v567_v39 }
  0xb3   : > { %489 = vmatmul.mubr.f32.gmra.mxu0 %v289_v41  ;;  %663 = vmatprep.subr.mxu0 %v562_v0 }
  0xb4   : > { %985 = vmatprep.subr.mxu1 %v566_v42  ;;  %664 = vmatpush2.msra.mxu0 %v561_v46 }
  0xb5   : > { %1017 = vmatpush2.msra.mxu1 %v565_v43  ;;  %665 = vmatprep.subr.mxu0 %v560_v47 }
  0xb6   : > { %986 = vmatprep.subr.mxu1 %v564_v44  ;;  %666 = vmatpush2.msra.mxu0 %v559_v48 }
  0xb7   : > { %1018 = vmatpush2.msra.mxu1 %v563_v45 }
  0xb8   : > { %987 = vmatprep.subr.mxu1 %v562_v0 }
  0xb9   : > { %1019 = vmatpush2.msra.mxu1 %v561_v46 }
  0xba   : > { %988 = vmatprep.subr.mxu1 %v560_v47 }
  0xbb   : > { %1020 = vmatpush2.msra.mxu1 %v559_v48 }
 0x137   : > { %v400_v56 = vpop.f32.mrf.mxu0 }
 0x138   : > { %v401_v57 = vadd.f32 %v400_v56, %v1468_v54 }
 0x139   : > { %v402_v58 = vpop.f32.mrf.mxu0 }
 0x13a   : > { %v403_v59 = vadd.f32 %v402_v58, %v1472_v55  ;;  %v495_v62 = vmax.f32 %v401_v57, 0.0 }
 0x13b   : > { %v406_v60 = vpop.f32.mrf.mxu0 }
 0x13c   : > { %v496_v61 = vmax.f32 %v403_v59, 0.0  ;;  %v407_v63 = vadd.f32 %v406_v60, %v1468_v54 }
 0x13d   : > { %v408_v1 = vpop.f32.mrf.mxu0 }
 0x13e   : > { %v409_v2 = vadd.f32 %v408_v1, %v1472_v55  ;;  %667 = vmatprep.mubr.f32.mxu0 %v496_v61  ;;  %v497_v5 = vmax.f32 %v407_v63, 0.0 }
 0x13f   : > { %v412_v3 = vpop.f32.mrf.mxu0  ;;  %668 = vmatmul.mubr.f32.vlgmr.msra.gmra.mxu0 %v495_v62 }
 0x140   : > { %v498_v4 = vmax.f32 %v409_v2, 0.0  ;;  %v413_v6 = vadd.f32 %v412_v3, %v1468_v54 }
 0x141   : > { %v414_v7 = vpop.f32.mrf.mxu0 }
 0x142   : > { %v415_v8 = vadd.f32 %v414_v7, %v1472_v55  ;;  %673 = vmatprep.mubr.f32.mxu0 %v498_v4  ;;  %v499_v11 = vmax.f32 %v413_v6, 0.0 }
 0x143   : > { %v418_v9 = vpop.f32.mrf.mxu0  ;;  %674 = vmatmul.mubr.f32.gmra.mxu0 %v497_v5 }
 0x144   : > { %v500_v10 = vmax.f32 %v415_v8, 0.0  ;;  %v419_v12 = vadd.f32 %v418_v9, %v1468_v54 }
 0x145   : > { %v420_v13 = vpop.f32.mrf.mxu0 }
 0x146   : > { %v421_v14 = vadd.f32 %v420_v13, %v1472_v55  ;;  %679 = vmatprep.mubr.f32.mxu0 %v500_v10  ;;  %v501_v17 = vmax.f32 %v419_v12, 0.0 }
 0x147   : > { %v424_v15 = vpop.f32.mrf.mxu0  ;;  %680 = vmatmul.mubr.f32.gmra.mxu0 %v499_v11 }
 0x148   : > { %v502_v16 = vmax.f32 %v421_v14, 0.0  ;;  %v425_v18 = vadd.f32 %v424_v15, %v1468_v54 }
 0x149   : > { %v426_v19 = vpop.f32.mrf.mxu0 }
 0x14a   : > { %685 = vmatprep.mubr.f32.mxu0 %v502_v16  ;;  %v427_v20 = vadd.f32 %v426_v19, %v1472_v55  ;;  %v503_v23 = vmax.f32 %v425_v18, 0.0 }
 0x14b   : > { %v430_v21 = vpop.f32.mrf.mxu0  ;;  %686 = vmatmul.mubr.f32.gmra.mxu0 %v501_v17 }
 0x14c   : > { %v504_v22 = vmax.f32 %v427_v20, 0.0  ;;  %v431_v24 = vadd.f32 %v430_v21, %v1468_v54 }
 0x14d   : > { %v432_v25 = vpop.f32.mrf.mxu0 }
 0x14e   : > { %v433_v26 = vadd.f32 %v432_v25, %v1472_v55  ;;  %691 = vmatprep.mubr.f32.mxu1 %v504_v22  ;;  %v505_v29 = vmax.f32 %v431_v24, 0.0 }
 0x14f   : > { %v436_v27 = vpop.f32.mrf.mxu0  ;;  %692 = vmatmul.mubr.f32.vlgmr.msra.gmra.mxu1 %v503_v23 }
 0x150   : > { %v506_v28 = vmax.f32 %v433_v26, 0.0  ;;  %v437_v30 = vadd.f32 %v436_v27, %v1468_v54 }
 0x151   : > { %v438_v31 = vpop.f32.mrf.mxu0 }
 0x152   : > { %v439_v32 = vadd.f32 %v438_v31, %v1472_v55  ;;  %697 = vmatprep.mubr.f32.mxu1 %v506_v28  ;;  %v507_v35 = vmax.f32 %v437_v30, 0.0  ;;  %v591_v30 = vld [vmem:[%s1638_s4] sm:$0x3] }
 0x153   : > { %v442_v33 = vpop.f32.mrf.mxu0  ;;  %698 = vmatmul.mubr.f32.gmra.mxu1 %v505_v29  ;;  %v1511_v31 = vrot.slane %v591_v30, %v326_v51 }
 0x154   : > { %v508_v34 = vmax.f32 %v439_v32, 0.0  ;;  %v443_v36 = vadd.f32 %v442_v33, %v1468_v54 }
 0x155   : > { %v444_v37 = vpop.f32.mrf.mxu0 }
 0x156   : > { %v445_v38 = vadd.f32 %v444_v37, %v1472_v55  ;;  %703 = vmatprep.mubr.f32.mxu1 %v508_v34  ;;  %v509_v41 = vmax.f32 %v443_v36, 0.0 }
 0x157   : > { %v448_v39 = vpop.f32.mrf.mxu0  ;;  %704 = vmatmul.mubr.f32.gmra.mxu1 %v507_v35 }
 0x158   : > { %v510_v40 = vmax.f32 %v445_v38, 0.0  ;;  %v449_v42 = vadd.f32 %v448_v39, %v1468_v54 }
 0x159   : > { %v450_v43 = vpop.f32.mrf.mxu0 }
 0x15a   : > { %v451_v44 = vadd.f32 %v450_v43, %v1472_v55  ;;  %709 = vmatprep.mubr.f32.mxu1 %v510_v40  ;;  %v511_v46 = vmax.f32 %v449_v42, 0.0 }
 0x15b   : > { %v454_v45 = vpop.f32.mrf.mxu0  ;;  %710 = vmatmul.mubr.f32.gmra.mxu1 %v509_v41 }
 0x15c   : > { %v512_v0 = vmax.f32 %v451_v44, 0.0  ;;  %v455_v47 = vadd.f32 %v454_v45, %v1468_v54 }
 0x15d   : > { %v456_v48 = vpop.f32.mrf.mxu0 }
 0x15e   : > { %v457_v49 = vadd.f32 %v456_v48, %v1472_v55  ;;  %715 = vmatprep.mubr.f32.mxu1 %v512_v0  ;;  %v513_v57 = vmax.f32 %v455_v47, 0.0 }
 0x15f   : > { %v460_v52 = vpop.f32.mrf.mxu0  ;;  %716 = vmatmul.mubr.f32.gmra.mxu1 %v511_v46 }
 0x160   : > { %v514_v56 = vmax.f32 %v457_v49, 0.0  ;;  %v461_v58 = vadd.f32 %v460_v52, %v1468_v54 }
 0x161   : > { %v462_v59 = vpop.f32.mrf.mxu0 }
 0x162   : > { %v463_v60 = vadd.f32 %v462_v59, %v1472_v55  ;;  %721 = vmatprep.mubr.f32.mxu1 %v514_v56  ;;  %v515_v63 = vmax.f32 %v461_v58, 0.0 }
 0x163   : > { %v466_v61 = vpop.f32.mrf.mxu0  ;;  %722 = vmatmul.mubr.f32.gmra.mxu1 %v513_v57 }
 0x164   : > { %v516_v62 = vmax.f32 %v463_v60, 0.0  ;;  %v467_v1 = vadd.f32 %v466_v61, %v1468_v54 }
 0x165   : > { %v468_v2 = vpop.f32.mrf.mxu0 }
 0x166   : > { %v469_v3 = vadd.f32 %v468_v2, %v1472_v55  ;;  %727 = vmatprep.mubr.f32.mxu1 %v516_v62  ;;  %v517_v6 = vmax.f32 %v467_v1, 0.0 }
 0x167   : > { %v472_v4 = vpop.f32.mrf.mxu0  ;;  %728 = vmatmul.mubr.f32.gmra.mxu1 %v515_v63 }
 0x168   : > { %v518_v5 = vmax.f32 %v469_v3, 0.0  ;;  %v473_v7 = vadd.f32 %v472_v4, %v1468_v54 }
 0x169   : > { %v474_v8 = vpop.f32.mrf.mxu0 }
 0x16a   : > { %v475_v9 = vadd.f32 %v474_v8, %v1472_v55  ;;  %733 = vmatprep.mubr.f32.mxu1 %v518_v5  ;;  %v519_v12 = vmax.f32 %v473_v7, 0.0 }
 0x16b   : > { %v478_v10 = vpop.f32.mrf.mxu0  ;;  %734 = vmatmul.mubr.f32.gmra.mxu1 %v517_v6 }
 0x16c   : > { %v520_v11 = vmax.f32 %v475_v9, 0.0  ;;  %v479_v13 = vadd.f32 %v478_v10, %v1468_v54 }
 0x16d   : > { %v480_v14 = vpop.f32.mrf.mxu0 }
 0x16e   : > { %v481_v15 = vadd.f32 %v480_v14, %v1472_v55  ;;  %739 = vmatprep.mubr.f32.mxu1 %v520_v11  ;;  %v521_v18 = vmax.f32 %v479_v13, 0.0 }
 0x16f   : > { %v484_v16 = vpop.f32.mrf.mxu0  ;;  %740 = vmatmul.mubr.f32.gmra.mxu1 %v519_v12 }
 0x170   : > { %v522_v17 = vmax.f32 %v481_v15, 0.0  ;;  %v485_v19 = vadd.f32 %v484_v16, %v1468_v54 }
 0x171   : > { %v486_v20 = vpop.f32.mrf.mxu0 }
 0x172   : > { %v487_v21 = vadd.f32 %v486_v20, %v1472_v55  ;;  %745 = vmatprep.mubr.f32.mxu1 %v522_v17  ;;  %v523_v24 = vmax.f32 %v485_v19, 0.0 }
 0x173   : > { %v490_v22 = vpop.f32.mrf.mxu0  ;;  %746 = vmatmul.mubr.f32.gmra.mxu1 %v521_v18 }
 0x174   : > { %v524_v23 = vmax.f32 %v487_v21, 0.0  ;;  %v491_v25 = vadd.f32 %v490_v22, %v1468_v54  ;;  %v1516_v54 = vrot.slane %v591_v30, %v330_v53 }
 0x175   : > { %v492_v26 = vpop.f32.mrf.mxu0 }
 0x176   : > { %v493_v27 = vadd.f32 %v492_v26, %v1472_v55  ;;  %751 = vmatprep.mubr.f32.mxu1 %v524_v23  ;;  %v525_v29 = vmax.f32 %v491_v25, 0.0 }
 0x177   : > { %752 = vmatmul.mubr.f32.gmra.mxu1 %v523_v24 }
 0x178   : > { %v526_v28 = vmax.f32 %v493_v27, 0.0 }
 0x17a   : > { %757 = vmatprep.mubr.f32.mxu1 %v526_v28 }
 0x17b   : > { %758 = vmatmul.mubr.f32.gmra.mxu1 %v525_v29 }
 0x1ff   : > { %v669_v55 = vpop.f32.mrf.mxu0 }
 0x200   : > { %v670_v32 = vadd.f32 %v669_v55, %v1511_v31 }
 0x201   : > { %v671_v33 = vpop.f32.mrf.mxu0 }
 0x202   : > { %v764_v34 = vmax.f32 %v670_v32, 0.0  ;;  %v672_v35 = vadd.f32 %v671_v33, %v1516_v54 }
 0x203   : > { %v675_v36 = vpop.f32.mrf.mxu0 }
 0x204   : > { %796 = vst [vmem:[%s1520_s12] sm:$0xff] %v764_v34  ;;  %v765_v51 = vmax.f32 %v672_v35, 0.0  ;;  %v676_v50 = vadd.f32 %v675_v36, %v1511_v31 }
 0x205   : > { %v677_v53 = vpop.f32.mrf.mxu0 }
 0x206   : > { %797 = vst [vmem:[%s1520_s12 + $0x8] sm:$0xff] %v765_v51  ;;  %v766_v37 = vmax.f32 %v676_v50, 0.0  ;;  %v678_v38 = vadd.f32 %v677_v53, %v1516_v54 }
 0x207   : > { %v681_v39 = vpop.f32.mrf.mxu0 }
 0x208   : > { %798 = vst [vmem:[%s1520_s12 + $0x10] sm:$0xff] %v766_v37  ;;  %v767_v40 = vmax.f32 %v678_v38, 0.0  ;;  %v682_v41 = vadd.f32 %v681_v39, %v1511_v31 }
 0x209   : > { %v683_v42 = vpop.f32.mrf.mxu0 }
 0x20a   : > { %799 = vst [vmem:[%s1520_s12 + $0x18] sm:$0xff] %v767_v40  ;;  %v768_v43 = vmax.f32 %v682_v41, 0.0  ;;  %v684_v44 = vadd.f32 %v683_v42, %v1516_v54 }
 0x20b   : > { %v687_v45 = vpop.f32.mrf.mxu0 }
 0x20c   : > { %800 = vst [vmem:[%s1520_s12 + $0x20] sm:$0xff] %v768_v43  ;;  %v769_v0 = vmax.f32 %v684_v44, 0.0  ;;  %v688_v46 = vadd.f32 %v687_v45, %v1511_v31 }
 0x20d   : > { %v689_v47 = vpop.f32.mrf.mxu0 }
 0x20e   : > { %801 = vst [vmem:[%s1520_s12 + $0x28] sm:$0xff] %v769_v0  ;;  %v770_v48 = vmax.f32 %v688_v46, 0.0  ;;  %v690_v49 = vadd.f32 %v689_v47, %v1516_v54 }
 0x20f   : > { %v693_v52 = vpop.f32.mrf.mxu1 }
 0x210   : > { %802 = vst [vmem:[%s1520_s12 + $0x30] sm:$0xff] %v770_v48  ;;  %v771_v56 = vmax.f32 %v690_v49, 0.0  ;;  %v694_v57 = vadd.f32 %v693_v52, %v1511_v31 }
 0x211   : > { %v695_v58 = vpop.f32.mrf.mxu1 }
 0x212   : > { %803 = vst [vmem:[%s1520_s12 + $0x38] sm:$0xff] %v771_v56  ;;  %v772_v59 = vmax.f32 %v694_v57, 0.0  ;;  %v696_v60 = vadd.f32 %v695_v58, %v1516_v54 }
 0x213   : > { %v699_v61 = vpop.f32.mrf.mxu1 }
 0x214   : > { %804 = vst [vmem:[%s1520_s12 + $0x40] sm:$0xff] %v772_v59  ;;  %v773_v62 = vmax.f32 %v696_v60, 0.0  ;;  %v700_v63 = vadd.f32 %v699_v61, %v1511_v31 }
 0x215   : > { %v701_v1 = vpop.f32.mrf.mxu1 }
 0x216   : > { %805 = vst [vmem:[%s1520_s12 + $0x48] sm:$0xff] %v773_v62  ;;  %v774_v2 = vmax.f32 %v700_v63, 0.0  ;;  %v702_v3 = vadd.f32 %v701_v1, %v1516_v54 }
 0x217   : > { %v705_v4 = vpop.f32.mrf.mxu1 }
 0x218   : > { %806 = vst [vmem:[%s1520_s12 + $0x50] sm:$0xff] %v774_v2  ;;  %v775_v5 = vmax.f32 %v702_v3, 0.0  ;;  %v706_v6 = vadd.f32 %v705_v4, %v1511_v31 }
 0x219   : > { %v707_v7 = vpop.f32.mrf.mxu1 }
 0x21a   : > { %807 = vst [vmem:[%s1520_s12 + $0x58] sm:$0xff] %v775_v5  ;;  %v776_v8 = vmax.f32 %v706_v6, 0.0  ;;  %v708_v9 = vadd.f32 %v707_v7, %v1516_v54 }
 0x21b   : > { %v711_v10 = vpop.f32.mrf.mxu1 }
 0x21c   : > { %808 = vst [vmem:[%s1520_s12 + $0x60] sm:$0xff] %v776_v8  ;;  %v777_v11 = vmax.f32 %v708_v9, 0.0  ;;  %v712_v12 = vadd.f32 %v711_v10, %v1511_v31 }
 0x21d   : > { %v713_v13 = vpop.f32.mrf.mxu1 }
 0x21e   : > { %809 = vst [vmem:[%s1520_s12 + $0x68] sm:$0xff] %v777_v11  ;;  %v778_v14 = vmax.f32 %v712_v12, 0.0  ;;  %v714_v15 = vadd.f32 %v713_v13, %v1516_v54 }
 0x21f   : > { %v717_v16 = vpop.f32.mrf.mxu1 }
 0x220   : > { %810 = vst [vmem:[%s1520_s12 + $0x70] sm:$0xff] %v778_v14  ;;  %v779_v17 = vmax.f32 %v714_v15, 0.0  ;;  %v718_v18 = vadd.f32 %v717_v16, %v1511_v31 }
 0x221   : > { %v719_v19 = vpop.f32.mrf.mxu1 }
 0x222   : > { %811 = vst [vmem:[%s1520_s12 + $0x78] sm:$0xff] %v779_v17  ;;  %v780_v20 = vmax.f32 %v718_v18, 0.0  ;;  %v720_v21 = vadd.f32 %v719_v19, %v1516_v54 }
 0x223   : > { %v723_v22 = vpop.f32.mrf.mxu1 }
 0x224   : > { %812 = vst [vmem:[%s1520_s12 + $0x80] sm:$0xff] %v780_v20  ;;  %v781_v23 = vmax.f32 %v720_v21, 0.0  ;;  %v724_v24 = vadd.f32 %v723_v22, %v1511_v31 }
 0x225   : > { %v725_v25 = vpop.f32.mrf.mxu1 }
 0x226   : > { %813 = vst [vmem:[%s1520_s12 + $0x88] sm:$0xff] %v781_v23  ;;  %v782_v26 = vmax.f32 %v724_v24, 0.0  ;;  %v726_v27 = vadd.f32 %v725_v25, %v1516_v54 }
 0x227   : > { %v729_v28 = vpop.f32.mrf.mxu1 }
 0x228   : > { %814 = vst [vmem:[%s1520_s12 + $0x90] sm:$0xff] %v782_v26  ;;  %v783_v29 = vmax.f32 %v726_v27, 0.0  ;;  %v730_v30 = vadd.f32 %v729_v28, %v1511_v31 }
 0x229   : > { %v731_v55 = vpop.f32.mrf.mxu1 }
 0x22a   : > { %815 = vst [vmem:[%s1520_s12 + $0x98] sm:$0xff] %v783_v29  ;;  %v784_v32 = vmax.f32 %v730_v30, 0.0  ;;  %v732_v33 = vadd.f32 %v731_v55, %v1516_v54 }
 0x22b   : > { %v735_v34 = vpop.f32.mrf.mxu1 }
 0x22c   : > { %816 = vst [vmem:[%s1520_s12 + $0xa0] sm:$0xff] %v784_v32  ;;  %v785_v35 = vmax.f32 %v732_v33, 0.0  ;;  %v736_v36 = vadd.f32 %v735_v34, %v1511_v31 }
 0x22d   : > { %v737_v51 = vpop.f32.mrf.mxu1 }
 0x22e   : > { %817 = vst [vmem:[%s1520_s12 + $0xa8] sm:$0xff] %v785_v35  ;;  %v786_v50 = vmax.f32 %v736_v36, 0.0  ;;  %v738_v53 = vadd.f32 %v737_v51, %v1516_v54 }
 0x22f   : > { %v741_v37 = vpop.f32.mrf.mxu1 }
 0x230   : > { %818 = vst [vmem:[%s1520_s12 + $0xb0] sm:$0xff] %v786_v50  ;;  %v787_v38 = vmax.f32 %v738_v53, 0.0  ;;  %v742_v39 = vadd.f32 %v741_v37, %v1511_v31 }
 0x231   : > { %v743_v40 = vpop.f32.mrf.mxu1 }
 0x232   : > { %819 = vst [vmem:[%s1520_s12 + $0xb8] sm:$0xff] %v787_v38  ;;  %v788_v41 = vmax.f32 %v742_v39, 0.0  ;;  %v744_v42 = vadd.f32 %v743_v40, %v1516_v54 }
 0x233   : > { %v747_v43 = vpop.f32.mrf.mxu1 }
 0x234   : > { %820 = vst [vmem:[%s1520_s12 + $0xc0] sm:$0xff] %v788_v41  ;;  %v789_v44 = vmax.f32 %v744_v42, 0.0  ;;  %v748_v45 = vadd.f32 %v747_v43, %v1511_v31 }
 0x235   : > { %v749_v0 = vpop.f32.mrf.mxu1 }
 0x236   : > { %821 = vst [vmem:[%s1520_s12 + $0xc8] sm:$0xff] %v789_v44  ;;  %v790_v46 = vmax.f32 %v748_v45, 0.0  ;;  %v750_v47 = vadd.f32 %v749_v0, %v1516_v54 }
 0x237   : > { %v753_v48 = vpop.f32.mrf.mxu1 }
 0x238   : > { %822 = vst [vmem:[%s1520_s12 + $0xd0] sm:$0xff] %v790_v46  ;;  %v791_v49 = vmax.f32 %v750_v47, 0.0  ;;  %v754_v52 = vadd.f32 %v753_v48, %v1511_v31 }
 0x239   : > { %v755_v56 = vpop.f32.mrf.mxu1 }
 0x23a   : > { %823 = vst [vmem:[%s1520_s12 + $0xd8] sm:$0xff] %v791_v49  ;;  %v792_v57 = vmax.f32 %v754_v52, 0.0  ;;  %v756_v58 = vadd.f32 %v755_v56, %v1516_v54 }
 0x23b   : > { %v759_v59 = vpop.f32.mrf.mxu1 }
 0x23c   : > { %824 = vst [vmem:[%s1520_s12 + $0xe0] sm:$0xff] %v792_v57  ;;  %v793_v60 = vmax.f32 %v756_v58, 0.0  ;;  %v760_v61 = vadd.f32 %v759_v59, %v1511_v31 }
 0x23d   : > { %v761_v62 = vpop.f32.mrf.mxu1 }
 0x23e   : > { %825 = vst [vmem:[%s1520_s12 + $0xe8] sm:$0xff] %v793_v60  ;;  %v794_v63 = vmax.f32 %v760_v61, 0.0  ;;  %v762_v1 = vadd.f32 %v761_v62, %v1516_v54 }
 0x240   : > { %826 = vst [vmem:[%s1520_s12 + $0xf0] sm:$0xff] %v794_v63  ;;  %v795_v2 = vmax.f32 %v762_v1, 0.0 }
 0x242   : > { %827 = vst [vmem:[%s1520_s12 + $0xf8] sm:$0xff] %v795_v2 }
 0x243   : > { %1188 = shalt.err (!%p1185_p9)
}
 0x244   : > { %s1189_s24 = scalar_lea.hbm %s1587_s13, 4096  ;;  %s1193_s10 = scalar_lea.hbm %s1639_s5, 8192 }
 0x245   : > { %p1190_p13 = scmp.ne.s32.totalorder %s1587_s13, %s1189_s24  ;;  %p1194_p4 = scmp.lt.s32.totalorder %s1587_s13, %s1639_s5 }
 0x246   : > { %p1195_p8 = scmp.lt.s32.totalorder %s1193_s10, %s1189_s24 }
 0x247   : > { %p1191_p5 = pnand %p1190_p13, %p1655_p10 }
 0x248   : > { %p1196_p3 = por %p1195_p8, %p1194_p4 }
 0x249   : > { %p1192_p0 = pneg %p1191_p5 }
 0x24b   : > { %p1197_p11 = pnand %p1196_p3, %p1192_p0 }
 0x24d   : > { %1200 = shalt.err (!%p1197_p11)
}
 0x24e   : > { %s1254_s28 = smov 256   ;;  %s1255_s7 = smov 16  }
 0x24f   : > { %1031 = dma.vmem_to_hbm [thread:$0]  (%p1655_p10), %s1589_s6, 4096, %s1587_s13, %s829_s22, %s1254_s28, %s1254_s28, %s1255_s7  }
 0x250 PF: > { %s858_s9 = sand.u32 1, %s1231_s18   ;;  %p1656_p1 = scmp.ne.s32.totalorder %s1645_s25, 0 }
 0x251   : > { %p1657_p2 = scmp.ge.s32.totalorder %s1243_s21, 2  ;;  %s859_s14 = scalar_lea.sflag [#allocation4], %s858_s9 }
 0x253   : > { %p1045_p6 = pnand %p1657_p2, %p1656_p1 }
 0x255   : > { %p1046_p12 = pneg %p1045_p6 }
 0x257   : > { %1226 = dma.done.wait (%p1046_p12), %s859_s14, 4096  }
 0x258   : > { %1228 = vsyncadd (%p1046_p12), %s859_s14, 4294963200  ;;  %p19_p7 = scmp.ge.s32.totalorder %s1358_s15, 4   ;;  %s1658_s18 = smov %s1235_s19 }
 0x259   : > { %s1659_s19 = smov %s1239_s20  ;;  %s1660_s20 = smov %s1374_s27 }
 0x25a   : > { %s1661_s21 = smov %s1358_s15  ;;  %21 = sbr.rel (!%p19_p7) target bundleno = 6 (0x6), region = 93 }
 0x25f   :  { %864 = vsyncpa [#allocation3], 1 }
 0x260   :  { %866 = vsyncpa [#allocation3 + $0x1], 1 }
 0x261   :  { %867 = vsyncpa [#allocation6], 1 }
 0x262   :  { %868 = vsyncpa [#allocation4], 1 }
 0x263   :  { %870 = vsyncpa [#allocation4 + $0x1], 1 }

</bundles_post_ra>
